<compile_context>
chip_gen: v7x
topology: tpu7x:2x2x1
jax: 0.10.0
libtpu: 0.0.40
codegen_flags: <defaults>
</compile_context>

<pallas_src>
import jax
import jax.numpy as jnp
from jax.experimental import pallas as pl
from jax.experimental.pallas import tpu as pltpu

HIDDEN = 32
BN_EPS = 1e-5
_MAX_TB = 8192  # per-step overhead already fully amortized well before this


def _round_up(x, m):
    return ((x + m - 1) // m) * m


def _vmem_capacity_bytes():
    try:
        return int(pltpu.get_tpu_info().vmem_capacity_bytes)
    except Exception:
        return 64 * 1024 * 1024  # conservative fallback: v7x per-TC physical VMEM


def _pick_batch_tile(batch, input_size, out_size, itemsize):
    """Largest batch tile (multiple of 8) that fits the VMEM budget."""
    vmem_cap = _vmem_capacity_bytes()
    # Per-row VMEM: double-buffered x + out streams plus the two (row, HIDDEN)
    # f32 intermediates the kernel materializes.
    bytes_per_row = 2 * itemsize * input_size + 2 * 4 * out_size + 2 * 4 * HIDDEN
    budget = int(0.4 * vmem_cap)  # headroom for resident weights + compiler scratch
    tb = max(8, (budget // max(bytes_per_row, 1)) // 8 * 8)
    tb = min(tb, _MAX_TB)
    # v7x megacore: keep >= 2 grid tiles so ("parallel",) shards across both TCs.
    if batch >= 16:
        tb = min(tb, _round_up(pl.cdiv(batch, 2), 8))
    tb = min(tb, _round_up(batch, 8))
    return tb, vmem_cap


def _mlp_kernel(x_ref, w1_ref, b1_ref, w2_ref, b2_ref, w3_ref, b3_ref, o_ref):
    x = x_ref[...]                                                     # (TB, in)

    # Linear 1 + ReLU
    h = jnp.dot(x, w1_ref[...], preferred_element_type=jnp.float32) + b1_ref[...]
    h = jnp.maximum(h, 0.0).astype(w2_ref.dtype)

    # BatchNorm (eval) pre-folded into w2/b2; Dropout -> identity.
    # Linear 2 + ReLU
    h = jnp.dot(h, w2_ref[...], preferred_element_type=jnp.float32) + b2_ref[...]
    h = jnp.maximum(h, 0.0).astype(w3_ref.dtype)

    # Linear 3 (narrow output head, written at its true width -- no lane padding)
    o_ref[...] = (jnp.dot(h, w3_ref[...], preferred_element_type=jnp.float32)
                  + b3_ref[...])


def improved_classification_forward(x, params, *, block_batch=None, stream_dtype=None):
    """x: (batch, input_size) float32. Returns (batch, output_size) float32.

    block_batch: optional explicit batch tile (rounded to 8). Default: derived
                 from VMEM capacity.
    stream_dtype: optional dtype (e.g. jnp.bfloat16) for streaming x and the
                  weights; accumulation stays f32.
    """
    batch, input_size = x.shape
    out_size = params["w3"].shape[1]

    # ---- Host-side (trace-time) parameter folding -------------------------
    # Eval BN: y = (h - rmean) * gamma / sqrt(rvar + eps) + beta
    #            = h * scale + shift; fold into Linear2 (both affine -> exact).
    scale = params["gamma"] * jax.lax.rsqrt(params["running_var"] + BN_EPS)   # (1, H)
    shift = params["beta"] - params["running_mean"] * scale                   # (1, H)
    w2f = scale.reshape(-1, 1) * params["w2"]                                 # (H, H)
    b2f = params["b2"] + shift @ params["w2"]                                 # (1, H)

    w1, b1, w3, b3 = params["w1"], params["b1"], params["w3"], params["b3"]
    if stream_dtype is not None:
        x = x.astype(stream_dtype)
        w1, w2f, w3 = (w.astype(stream_dtype) for w in (w1, w2f, w3))
    itemsize = jnp.dtype(x.dtype).itemsize

    # ---- Batch tiling (no host-side padding; ragged tail handled by Pallas) --
    tb, vmem_cap = _pick_batch_tile(batch, input_size, out_size, itemsize)
    if block_batch is not None:
        tb = max(8, _round_up(min(block_batch, batch), 8))
    grid = (pl.cdiv(batch, tb),)

    const_map = lambda i: (0, 0)

    flops = 2 * batch * (input_size * HIDDEN + HIDDEN * HIDDEN + HIDDEN * out_size)
    bytes_accessed = (itemsize * batch * input_size            # x read
                      + 4 * batch * out_size                   # out write
                      + itemsize * (input_size * HIDDEN + HIDDEN * HIDDEN
                                    + HIDDEN * out_size)       # weights
                      + 4 * (2 * HIDDEN + out_size))           # biases

    # Explicit VMEM limit: double-buffered streams + resident params + headroom.
    footprint = (2 * itemsize * tb * input_size
                 + 2 * 4 * tb * out_size
                 + 2 * 4 * tb * HIDDEN
                 + 2 * itemsize * (input_size * HIDDEN + HIDDEN * HIDDEN
                                   + HIDDEN * out_size)
                 + 2 * 4 * (2 * HIDDEN + out_size))
    vmem_limit = int(min(vmem_cap, max(footprint + (8 << 20), 16 << 20)))

    out = pl.pallas_call(
        _mlp_kernel,
        out_shape=jax.ShapeDtypeStruct((batch, out_size), jnp.float32),
        grid=grid,
        in_specs=[
            pl.BlockSpec((tb, input_size), lambda i: (i, 0)),   # x: streamed over batch
            pl.BlockSpec((input_size, HIDDEN), const_map),      # w1: VMEM-resident
            pl.BlockSpec((1, HIDDEN), const_map),               # b1
            pl.BlockSpec((HIDDEN, HIDDEN), const_map),          # w2 (BN folded in)
            pl.BlockSpec((1, HIDDEN), const_map),               # b2 (BN folded in)
            pl.BlockSpec((HIDDEN, out_size), const_map),        # w3 (true width)
            pl.BlockSpec((1, out_size), const_map),             # b3
        ],
        out_specs=pl.BlockSpec((tb, out_size), lambda i: (i, 0)),
        compiler_params=pltpu.CompilerParams(
            dimension_semantics=("parallel",),
            vmem_limit_bytes=vmem_limit),
        cost_estimate=pl.CostEstimate(
            flops=int(flops), transcendentals=0, bytes_accessed=int(bytes_accessed)),
    )(x, w1, b1, w2f, b2f, w3, b3)

    return out


def init_params(key, input_size, output_size):
    """Deterministic synthetic parameters matching the module's shapes.

    Linear weights stored transposed relative to PyTorch: (in, out).
    Biases / BN params kept 2D (1, dim) so they broadcast cleanly.
    """
    k1, k2, k3, k4, k5, k6, k7, k8 = jax.random.split(key, 8)
    s1 = 1.0 / jnp.sqrt(jnp.float32(input_size))
    s2 = 1.0 / jnp.sqrt(jnp.float32(HIDDEN))
    return dict(
        w1=jax.random.uniform(k1, (input_size, HIDDEN), jnp.float32, -s1, s1),
        b1=jax.random.uniform(k2, (1, HIDDEN), jnp.float32, -s1, s1),
        gamma=jnp.ones((1, HIDDEN), jnp.float32),            # BN weight init = 1
        beta=jnp.zeros((1, HIDDEN), jnp.float32),            # BN bias init = 0
        # Non-trivial running stats so the BN-folding path is actually tested.
        running_mean=0.1 * jax.random.normal(k7, (1, HIDDEN), jnp.float32),
        running_var=jnp.abs(jax.random.normal(k8, (1, HIDDEN), jnp.float32)) + 0.5,
        w2=jax.random.uniform(k3, (HIDDEN, HIDDEN), jnp.float32, -s2, s2),
        b2=jax.random.uniform(k4, (1, HIDDEN), jnp.float32, -s2, s2),
        w3=jax.random.uniform(k5, (HIDDEN, output_size), jnp.float32, -s2, s2),
        b3=jax.random.uniform(k6, (1, output_size), jnp.float32, -s2, s2),
    )


def _reference_forward(x, p):
    """Pure-JAX reference (unfolded BN) for correctness check."""
    h = jnp.maximum(x @ p["w1"] + p["b1"], 0.0)
    h = (h - p["running_mean"]) / jnp.sqrt(p["running_var"] + BN_EPS)
    h = h * p["gamma"] + p["beta"]
    h = jnp.maximum(h @ p["w2"] + p["b2"], 0.0)
    return h @ p["w3"] + p["b3"]


if __name__ == "__main__":
    key = jax.random.PRNGKey(0)
    kx, kp = jax.random.split(key)

    # Small shapes; batch/tile chosen so the grid has several steps and a
    # ragged tail block (40 = 16 + 16 + 8) to exercise masked writeback.
    batch, input_size, output_size = 40, 16, 4
    x = jax.random.normal(kx, (batch, input_size), jnp.float32)
    params = init_params(kp, input_size, output_size)

    out = improved_classification_forward(x, params, block_batch=16)
    out = jax.block_until_ready(out)

    ref = _reference_forward(x, params)
    assert out.shape == (batch, output_size)
    assert jnp.allclose(out, ref, atol=1e-4, rtol=1e-4), "mismatch vs reference"

    print("KERNEL_OK")
</pallas_src>

<mosaic_0001>
module attributes {stable_mosaic.version = 11 : i64} {
  func.func @_mlp_kernel(%arg0: i32, %arg1: memref<16x16xf32, #tpu.memory_space<vmem>>, %arg2: memref<16x32xf32, #tpu.memory_space<vmem>>, %arg3: memref<1x32xf32, #tpu.memory_space<vmem>>, %arg4: memref<32x32xf32, #tpu.memory_space<vmem>>, %arg5: memref<1x32xf32, #tpu.memory_space<vmem>>, %arg6: memref<32x4xf32, #tpu.memory_space<vmem>>, %arg7: memref<1x4xf32, #tpu.memory_space<vmem>>, %arg8: memref<16x4xf32, #tpu.memory_space<vmem>>) attributes {dimension_semantics = [#tpu.dimension_semantics<parallel>], iteration_bounds = array<i64: 3>, scalar_prefetch = 0 : i64, scratch_operands = 0 : i64, tpu.core_type = #tpu.core_type<tc>, window_params = [{transform_indices = @transform_0, window_bounds = array<i64: 16, 16>}, {pipeline_mode = #tpu.pipeline_mode<synchronous>, transform_indices = @transform_1, window_bounds = array<i64: 16, 32>}, {pipeline_mode = #tpu.pipeline_mode<synchronous>, transform_indices = @transform_2, window_bounds = array<i64: 1, 32>}, {pipeline_mode = #tpu.pipeline_mode<synchronous>, transform_indices = @transform_3, window_bounds = array<i64: 32, 32>}, {pipeline_mode = #tpu.pipeline_mode<synchronous>, transform_indices = @transform_4, window_bounds = array<i64: 1, 32>}, {pipeline_mode = #tpu.pipeline_mode<synchronous>, transform_indices = @transform_5, window_bounds = array<i64: 32, 4>}, {pipeline_mode = #tpu.pipeline_mode<synchronous>, transform_indices = @transform_6, window_bounds = array<i64: 1, 4>}, {transform_indices = @transform_7, window_bounds = array<i64: 16, 4>}]} {
    %c0 = arith.constant 0 : index
    %c0_0 = arith.constant 0 : index
    %0 = vector.load %arg1[%c0, %c0_0] : memref<16x16xf32, #tpu.memory_space<vmem>>, vector<16x16xf32>
    %c0_1 = arith.constant 0 : index
    %c0_2 = arith.constant 0 : index
    %1 = vector.load %arg2[%c0_1, %c0_2] : memref<16x32xf32, #tpu.memory_space<vmem>>, vector<16x32xf32>
    %cst = arith.constant dense<0.000000e+00> : vector<16x32xf32>
    %2 = tpu.matmul %0, %1, %cst {dimension_numbers = #tpu.dot_dimension_numbers<[1], [0], [0], [1], [0, 0, 1, 1], [], []>} : vector<16x16xf32>, vector<16x32xf32>, vector<16x32xf32> -> vector<16x32xf32>
    %c0_3 = arith.constant 0 : index
    %c0_4 = arith.constant 0 : index
    %3 = vector.load %arg3[%c0_3, %c0_4] : memref<1x32xf32, #tpu.memory_space<vmem>>, vector<1x32xf32>
    %4 = vector.broadcast %3 : vector<1x32xf32> to vector<16x32xf32>
    %5 = arith.addf %2, %4 : vector<16x32xf32>
    %cst_5 = arith.constant 0.000000e+00 : f32
    %6 = vector.broadcast %cst_5 : f32 to vector<16x32xf32>
    %7 = arith.maximumf %5, %6 : vector<16x32xf32>
    %c0_6 = arith.constant 0 : index
    %c0_7 = arith.constant 0 : index
    %8 = vector.load %arg4[%c0_6, %c0_7] : memref<32x32xf32, #tpu.memory_space<vmem>>, vector<32x32xf32>
    %cst_8 = arith.constant dense<0.000000e+00> : vector<16x32xf32>
    %9 = tpu.matmul %7, %8, %cst_8 {dimension_numbers = #tpu.dot_dimension_numbers<[1], [0], [0], [1], [0, 0, 1, 1], [], []>} : vector<16x32xf32>, vector<32x32xf32>, vector<16x32xf32> -> vector<16x32xf32>
    %c0_9 = arith.constant 0 : index
    %c0_10 = arith.constant 0 : index
    %10 = vector.load %arg5[%c0_9, %c0_10] : memref<1x32xf32, #tpu.memory_space<vmem>>, vector<1x32xf32>
    %11 = vector.broadcast %10 : vector<1x32xf32> to vector<16x32xf32>
    %12 = arith.addf %9, %11 : vector<16x32xf32>
    %cst_11 = arith.constant 0.000000e+00 : f32
    %13 = vector.broadcast %cst_11 : f32 to vector<16x32xf32>
    %14 = arith.maximumf %12, %13 : vector<16x32xf32>
    %c0_12 = arith.constant 0 : index
    %c0_13 = arith.constant 0 : index
    %15 = vector.load %arg6[%c0_12, %c0_13] : memref<32x4xf32, #tpu.memory_space<vmem>>, vector<32x4xf32>
    %cst_14 = arith.constant dense<0.000000e+00> : vector<16x4xf32>
    %16 = tpu.matmul %14, %15, %cst_14 {dimension_numbers = #tpu.dot_dimension_numbers<[1], [0], [0], [1], [0, 0, 1, 1], [], []>} : vector<16x32xf32>, vector<32x4xf32>, vector<16x4xf32> -> vector<16x4xf32>
    %c0_15 = arith.constant 0 : index
    %c0_16 = arith.constant 0 : index
    %17 = vector.load %arg7[%c0_15, %c0_16] : memref<1x4xf32, #tpu.memory_space<vmem>>, vector<1x4xf32>
    %18 = vector.broadcast %17 : vector<1x4xf32> to vector<16x4xf32>
    %19 = arith.addf %16, %18 : vector<16x4xf32>
    %c0_17 = arith.constant 0 : index
    %c0_18 = arith.constant 0 : index
    %20 = vector.load %arg8[%c0_17, %c0_18] : memref<16x4xf32, #tpu.memory_space<vmem>>, vector<16x4xf32>
    tpu.vector_store %arg8[%c0_17, %c0_18], %19 {strides = array<i32>} : memref<16x4xf32, #tpu.memory_space<vmem>>, vector<16x4xf32>,
    return
  }
  func.func @transform_0(%arg0: i32) -> (i32, i32) {
    %c0_i32 = arith.constant 0 : i32
    %c0_i32_0 = arith.constant 0 : i32
    return %arg0, %c0_i32 : i32, i32
  }
  func.func @transform_1(%arg0: i32) -> (i32, i32) {
    %c0_i32 = arith.constant 0 : i32
    %c0_i32_0 = arith.constant 0 : i32
    %c0_i32_1 = arith.constant 0 : i32
    return %c0_i32, %c0_i32_0 : i32, i32
  }
  func.func @transform_2(%arg0: i32) -> (i32, i32) {
    %c0_i32 = arith.constant 0 : i32
    %c0_i32_0 = arith.constant 0 : i32
    %c0_i32_1 = arith.constant 0 : i32
    return %c0_i32, %c0_i32_0 : i32, i32
  }
  func.func @transform_3(%arg0: i32) -> (i32, i32) {
    %c0_i32 = arith.constant 0 : i32
    %c0_i32_0 = arith.constant 0 : i32
    %c0_i32_1 = arith.constant 0 : i32
    return %c0_i32, %c0_i32_0 : i32, i32
  }
  func.func @transform_4(%arg0: i32) -> (i32, i32) {
    %c0_i32 = arith.constant 0 : i32
    %c0_i32_0 = arith.constant 0 : i32
    %c0_i32_1 = arith.constant 0 : i32
    return %c0_i32, %c0_i32_0 : i32, i32
  }
  func.func @transform_5(%arg0: i32) -> (i32, i32) {
    %c0_i32 = arith.constant 0 : i32
    %c0_i32_0 = arith.constant 0 : i32
    %c0_i32_1 = arith.constant 0 : i32
    return %c0_i32, %c0_i32_0 : i32, i32
  }
  func.func @transform_6(%arg0: i32) -> (i32, i32) {
    %c0_i32 = arith.constant 0 : i32
    %c0_i32_0 = arith.constant 0 : i32
    %c0_i32_1 = arith.constant 0 : i32
    return %c0_i32, %c0_i32_0 : i32, i32
  }
  func.func @transform_7(%arg0: i32) -> (i32, i32) {
    %c0_i32 = arith.constant 0 : i32
    %c0_i32_0 = arith.constant 0 : i32
    return %arg0, %c0_i32 : i32, i32
  }
}

</mosaic_0001>

<bundles_post_ra>
// kernel: tpu_custom_call.1
= control target key start
LH: loop header
LB: loop body
LE: loop exit
PB: predicated region body
PF: predicated region fallthrough
CT: control target
= control target key end

     0   :  { %s1121_s24 = smov 0   ;;  %s1123_s25 = smov 0   ;;  %s1247_s0 = inlined_call_operand.vmem [shape: f32[40,16], index: 0, kind: input, shape index: {}]   ;;  %s1248_s1 = inlined_call_operand.vmem [shape: f32[16,32], index: 1, kind: input, shape index: {}]   ;;  %s1249_s2 = inlined_call_operand.vmem [shape: f32[1,32], index: 2, kind: input, shape index: {}]   ;;  %s1250_s3 = inlined_call_operand.vmem [shape: f32[32,32], index: 3, kind: input, shape index: {}]   ;;  %s1251_s4 = inlined_call_operand.vmem [shape: f32[1,32], index: 4, kind: input, shape index: {}]   ;;  %s1252_s5 = inlined_call_operand.vmem [shape: f32[32,4], index: 5, kind: input, shape index: {}]   ;;  %s1253_s6 = inlined_call_operand.vmem [shape: f32[1,4], index: 6, kind: input, shape index: {}]   ;;  %s1254_s7 = inlined_call_operand.vmem [shape: f32[40,4], index: 7, kind: output, shape index: {}]  }
   0x1   :  { %s1125_s26 = smov 0  }
   0x2 LB: > { %s1134_s27 = sadd.s32 4294967295, %s1047_s26   ;;  %s1136_s28 = sadd.s32 1, %s1047_s26   ;;  %s1047_s26 = sphi %s1125_s26, %s1258_s26   ;;  %s1043_s25 = sphi %s1123_s25, %s1257_s25   ;;  %s1039_s24 = sphi %s1121_s24, %s1256_s24  }
   0x3   : > { %s173_s29 = ssub.s32 %s1047_s26, %s1136_s28  ;;  %s176_s30 = sadd.s32 1, %s1043_s25 }
   0x4   : > { %p174_p0 = scmp.eq.s32.totalorder %s173_s29, 0  ;;  %p186_p1 = scmp.ne.s32.totalorder %s1043_s25, %s1039_s24 }
   0x5   : > { %p187_p2 = scmp.eq.s32.totalorder %s1134_s27, 2  ;;  %p807_p3 = scmp.ge.s32.totalorder %s1047_s26, 1 }
   0x6   : > { %s1144_s8 = scalar_select %p174_p0, %s1043_s25, %s176_s30  }
   0x7   : > { %p1146_p4 = por %p187_p2, %p186_p1  ;;  %p246_p5 = scmp.lt.s32.totalorder %s1047_s26, 4 }
   0x9   : > { %p247_p6 = pnand %p807_p3, %p246_p5 }
   0xa   : > { %v302_v0 = vld [vmem:[%s1248_s1] sm:$0xff] (!%p247_p6)  ;;  %v303_v1 = vld [vmem:[%s1248_s1 + $0x8] sm:$0xff] (!%p247_p6)  ;;  %s1157_s14 = sshll.u32 (!%p247_p6), %s1134_s27, 1  ;;  %vm311_vm0 = vcmask (!%p247_p6), 130048   ;;  %v397_v8 = vld [vmem:[%s1250_s3 + $0x10] sm:$0xff] (!%p247_p6)  ;;  %vm406_vm1 = vcmask (!%p247_p6), 261120  }
   0xb   : > { %250 = sbr.rel (%p247_p6) target bundleno = 725 (0x2d5), region = 48  ;;  %v395_v2 = vld [vmem:[%s1250_s3] sm:$0xff] (!%p247_p6)  ;;  %v885_v3 = vpack.c.bf16 (!%p247_p6), %v303_v1, %v302_v0  ;;  %p286_p7 = scmp.lt.s32.totalorder (!%p247_p6), %s1157_s14, 4  ;;  %v396_v4 = vld [vmem:[%s1250_s3 + $0x8] sm:$0xff] (!%p247_p6)  ;;  %v398_v9 = vld [vmem:[%s1250_s3 + $0x18] sm:$0xff] (!%p247_p6)  ;;  %vm582_vm2 = vcmask (!%p247_p6), 31744  }
   0xc   : > { %v889_v5 = vpack.c.bf16 (!%p247_p6), %v396_v4, %v395_v2  ;;  %v893_v10 = vpack.c.bf16 (!%p247_p6), %v398_v9, %v397_v8  ;;  %v490_v11 = vld [vmem:[%s1252_s5] sm:$0xff] (!%p247_p6)  ;;  %v491_v12 = vld [vmem:[%s1252_s5 + $0x8] sm:$0xff] (!%p247_p6)  ;;  %v492_v21 = vld [vmem:[%s1252_s5 + $0x10] sm:$0xff] (!%p247_p6)  ;;  %s278_s26 = sand.u32 (!%p247_p6), 1, %s1039_s24  }
   0xd   : > { %886 = vmatprep.subr.bf16.mxu0 (!%p247_p6), %v885_v3  ;;  %v897_v13 = vpack.c.bf16 (!%p247_p6), %v491_v12, %v490_v11  ;;  %v811_v14 = vld [vmem:[%s1249_s2] ss:$0 sm:$0xff] (!%p247_p6)  ;;  %v493_v22 = vld [vmem:[%s1252_s5 + $0x18] sm:$0xff] (!%p247_p6)  ;;  %s808_s29 = sshll.u32 (!%p247_p6), %s278_s26, 4 }
   0xe   : > { %888 = vmatpush3.bf16.msra.mxu0 (!%p247_p6), %v885_v3  ;;  %890 = vmatprep.subr.bf16.mxu1 (!%p247_p6), %v889_v5  ;;  %v901_v23 = vpack.c.bf16 (!%p247_p6), %v493_v22, %v492_v21  ;;  %v814_v24 = vld [vmem:[%s1251_s4] ss:$0 sm:$0xff] (!%p247_p6)  ;;  %s1202_s11 = scalar_lea.vmem (!%p247_p6), [#allocation2], %s808_s29  }
   0xf   : > { %892 = vmatpush3.bf16.msra.mxu1 (!%p247_p6), %v889_v5  ;;  %898 = vmatprep.subr.bf16.mxu0 (!%p247_p6), %v897_v13  ;;  %v817_v31 = vld [vmem:[%s1253_s6] ss:$0 sm:$0xff] (!%p247_p6) }
  0x10   : > { %894 = vmatprep.subr.bf16.mxu1 (!%p247_p6), %v893_v10 }
  0x12   : > { %s287_s19 = scalar_select %p286_p7, %s1157_s14, 4 }
  0x13   : > { %896 = vmatpush3.bf16.msra.mxu1 %v893_v10  ;;  %s593_s24 = ssub.s32 (%p1146_p4), 5, %s1157_s14  ;;  %s837_s12 = sshll.u32 (%p1146_p4), %s1134_s27, 4 }
  0x14   : > { %s810_s20 = sshll.u32 %s287_s19, 3  ;;  %p594_p8 = scmp.lt.s32.totalorder (%p1146_p4), %s593_s24, 2 }
  0x15   : > { %s289_s23 = scalar_lea.vmem %s1247_s0, %s810_s20  ;;  %s1213_s16 = scalar_lea.vmem (%p1146_p4), %s1254_s7, %s837_s12  }
  0x16   : > { %v300_v6 = vld [vmem:[%s289_s23] sm:$0xff]  ;;  %v301_v7 = vld [vmem:[%s289_s23 + $0x8] sm:$0xff] }
  0x17   : > { %860 = vmatprep.mubr.msk.f32.mxu0 %vm311_vm0, %v300_v6 }
  0x18   : > { %861 = vmatmul.mubr.msk.f32.vlgmr.msra.gmra.mrb[0].mxu0 %vm311_vm0, %v301_v7 }
  0x19   : > { %900 = vmatpush3.bf16.msra.mxu0 %v897_v13 }
  0x1a   : > { %902 = vmatprep.subr.bf16.mxu0 %v901_v23 }
  0x1d   : > { %904 = vmatpush3.bf16.msra.mxu0 %v901_v23 }
  0xeb   : > { %v862_v15 = vpop.f32.mrb[0].mxu0 }
  0xec   : > { %v390_v16 = vadd.f32 %v862_v15, %v811_v14  ;;  %v384_v17 = vpop.f32.mrb[1].mxu0 }
  0xed   : > { %v385_v18 = vadd.f32 %v811_v14, %v384_v17 }
  0xee   : > { %v394_v20 = vmax.f32 %v390_v16, 0.0 }
  0xef   : > { %v393_v19 = vmax.f32 %v385_v18, 0.0 }
  0xf1   : > { %871 = vmatprep.mubr.msk.f32.mxu1 %vm406_vm1, %v393_v19 }
  0xf2   : > { %872 = vmatmul.mubr.msk.f32.vlgmr.msra.gmra.mrb[0].mxu1 %vm406_vm1, %v394_v20 }
 0x1c5   : > { %v873_v25 = vpop.f32.mrb[0].mxu1 }
 0x1c6   : > { %v485_v26 = vadd.f32 %v873_v25, %v814_v24  ;;  %v479_v27 = vpop.f32.mrb[1].mxu1 }
 0x1c7   : > { %v480_v28 = vadd.f32 %v814_v24, %v479_v27 }
 0x1c8   : > { %v489_v30 = vmax.f32 %v485_v26, 0.0 }
 0x1c9   : > { %v488_v29 = vmax.f32 %v480_v28, 0.0 }
 0x1cb   : > { %882 = vmatprep.mubr.msk.f32.mxu0 %vm406_vm1, %v488_v29 }
 0x1cc   : > { %883 = vmatmul.mubr.msk.f32.vlgmr.msra.gmra.mrb[2].mxu0 %vm406_vm1, %v489_v30 }
 0x29d   : > { %591 = sbr.rel (!%p1146_p4) target bundleno = 725 (0x2d5), region = 52 }
 0x29f   : > { %v884_v32 = vpop.f32.mrb[2].mxu0 }
 0x2a0   : > { %v579_v33 = vadd.f32 %v884_v32, %v817_v31  ;;  %v573_v34 = vpop.f32.mrb[3].mxu0 }
 0x2a1   : > { %v574_v35 = vadd.f32 %v817_v31, %v573_v34 }
 0x2a2   : > { %584 = vst.msk [vmem:[%s1202_s11 + $0x8] sm:$0xff] %vm582_vm2, %v579_v33 }
 0x2a3   : > { %583 = vst.msk [vmem:[%s1202_s11] sm:$0xff] %vm582_vm2, %v574_v35 }
 0x2a4   : > { %s1260_s24 = smov (!%p594_p8, %s593_s24), 2 }
 0x2a5   : > { %s822_s17 = sshll.u32 %s1260_s24, 7 }
 0x2a6   : > { %p825_p9 = scmp.eq.s32.totalorder %s822_s17, 0 }
 0x2a7   : > { %s1219_s18 = sshrl.u32 (!%p825_p9), %s1260_s24, 1 }
 0x2a8   : > { %602 = sbr.rel (%p825_p9) target bundleno = 725 (0x2d5), region = 56  ;;  %p826_p10 = scmp.le.s32.totalorder (!%p825_p9), %s1219_s18, 0 }
 0x2af   : > { %760 = sbr.rel (%p826_p10) target bundleno = 704 (0x2c0), region = 132  ;;  %s1049_s27 = smov (!%p826_p10), %s1213_s16  }
 0x2b0   : > { %s1053_s9 = smov (!%p826_p10), %s1202_s11   ;;  %s1057_s14 = smov (!%p826_p10), 0  }
 0x2b1   : > { %s1061_s19 = smov (!%p826_p10), 0  }
 0x2b6 LB: >> { %v666_v36 = vld [vmem:[%s1055_s9] sm:$0xff]  ;;  %v668_v37 = vld [vmem:[%s1055_s9 + $0x8] sm:$0xff]  ;;  %s670_s20 = sadd.s32 1, %s1059_s14  ;;  %s660_s19 = sadd.s32 1, %s1063_s19   ;;  %s1063_s19 = sphi %s1061_s19, %s660_s19   ;;  %s1059_s14 = sphi %s1057_s14, %s1058_s14   ;;  %s1055_s9 = sphi %s1053_s9, %s675_s9   ;;  %s1051_s27 = sphi %s1049_s27, %s676_s27  }
 0x2b7   : >> { %667 = vst [vmem:[%s1051_s27] sm:$0xff] %v666_v36  ;;  %669 = vst [vmem:[%s1051_s27 + $0x8] sm:$0xff] %v668_v37  ;;  %p671_p11 = scmp.ge.s32.totalorder %s670_s20, %s1219_s18  ;;  %p659_p12 = scmp.ge.s32.totalorder %s660_s19, %s1219_s18 }
 0x2b9   : >> { %s1262_s20 = smov (%p671_p11, %s670_s20), 0  ;;  %662 = sbr.rel (!%p659_p12) target bundleno = 694 (0x2b6), region = 138 }
 0x2ba   : >> { %s827_s21 = sshll.u32 %s1262_s20, 4  ;;  %s1058_s14 = smov %s1262_s20  }
 0x2bb   : >> { %s675_s9 = scalar_lea.vmem %s1202_s11, %s827_s21 [#allocation2]   ;;  %s676_s27 = scalar_lea.vmem %s1213_s16, %s827_s21  }
 0x2c0 PF: > { %s1229_s22 = sand.u32 1, %s1260_s24   ;;  %s838_s23 = sshll.u32 %s1219_s18, 4 }
 0x2c1   : > { %s681_s26 = scalar_lea.vmem %s1202_s11, %s838_s23 [#allocation2]   ;;  %s683_s29 = scalar_lea.vmem %s1213_s16, %s838_s23  }
 0x2c2   : > { %p832_p13 = scmp.le.s32.totalorder %s1229_s22, 0 }
 0x2c3   : > { %s1065_s30 = smov (!%p832_p13), %s683_s29   ;;  %s1069_s10 = smov (!%p832_p13), %s681_s26  }
 0x2c4   : > { %774 = sbr.rel (%p832_p13) target bundleno = 725 (0x2d5), region = 143  ;;  %s1073_s12 = smov (!%p832_p13), 0  }
 0x2c5   : > { %s1077_s13 = smov (!%p832_p13), 0  }
 0x2cb LB: >> { %v693_v38 = vld [vmem:[%s1071_s10] sm:$0xff]  ;;  %s695_s24 = sadd.s32 1, %s1075_s12  ;;  %s687_s13 = sadd.s32 1, %s1079_s13   ;;  %s1079_s13 = sphi %s1077_s13, %s687_s13   ;;  %s1075_s12 = sphi %s1073_s12, %s1074_s12   ;;  %s1071_s10 = sphi %s1069_s10, %s700_s10   ;;  %s1067_s30 = sphi %s1065_s30, %s701_s30  }
 0x2cc   : >> { %694 = vst [vmem:[%s1067_s30] sm:$0xff] %v693_v38  ;;  %p696_p0 = scmp.ge.s32.totalorder %s695_s24, %s1229_s22  ;;  %p686_p1 = scmp.ge.s32.totalorder %s687_s13, %s1229_s22 }
 0x2ce   : >> { %s1264_s24 = smov (%p696_p0, %s695_s24), 0  ;;  %689 = sbr.rel (!%p686_p1) target bundleno = 715 (0x2cb), region = 149 }
 0x2cf   : >> { %s833_s11 = sshll.u32 %s1264_s24, 3  ;;  %s1074_s12 = smov %s1264_s24  }
 0x2d0   : >> { %s700_s10 = scalar_lea.vmem %s681_s26, %s833_s11 [#allocation2]   ;;  %s701_s30 = scalar_lea.vmem %s683_s29, %s833_s11  }
 0x2d5 PF: > { %p14_p2 = scmp.ge.s32.totalorder %s1136_s28, 5   ;;  %s1256_s24 = smov %s1043_s25 }
 0x2d6   : > { %s1257_s25 = smov %s1144_s8  ;;  %s1258_s26 = smov %s1136_s28 }
 0x2d7   :  { %16 = sbr.rel (!%p14_p2) target bundleno = 2 (0x2), region = 160 }

</bundles_post_ra>
